<compile_context>
chip_gen: v5e
topology: v5e:2x2
jax: 0.10.0
libtpu: 0.0.40
codegen_flags: <defaults>
</compile_context>

<pallas_src>
import functools

import jax
import jax.numpy as jnp
from jax.experimental import pallas as pl
from jax.experimental.pallas import tpu as pltpu


def _focal_kernel(x_ref, tgt_ref, alpha_ref,
                  loss_out_ref, alpha_out_ref,
                  loss_acc, alpha_acc,
                  *, gamma, hw, tile_hw, tiles_per_seg, need_mask):
    s_pid = pl.program_id(1)          # HW segment (parallel)
    j = pl.program_id(2)              # HW tile within the segment (arbitrary)

    @pl.when(j == 0)
    def _():
        loss_acc[...] = jnp.zeros_like(loss_acc)
        alpha_acc[...] = jnp.zeros_like(alpha_acc)

    x = x_ref[...].astype(jnp.float32)        # (C, T) logits, classes on sublanes
    tgt = tgt_ref[...].astype(jnp.int32)      # (1, T) class ids (any int width in HBM)
    C, T = x.shape

    # one-hot along the class (sublane) axis  (== self.one_hot_codes[target])
    class_iota = jax.lax.broadcasted_iota(jnp.int32, (C, T), 0)
    mask = (class_iota == tgt).astype(jnp.float32)             # (C, T)

    # softmax probability of the target class only (no full softmax matrix stored)
    m = jnp.max(x, axis=0, keepdims=True)                      # (1, T)
    e = jnp.exp(x - m)                                         # (C, T)
    s = jnp.sum(e, axis=0, keepdims=True)                      # (1, T)
    p_t = jnp.sum(e * mask, axis=0, keepdims=True)             # (1, T)
    probs = p_t / s + 1e-10                                    # matches PyTorch's +1e-10
    log_probs = jnp.log(probs)                                 # (1, T)

    # per-sample alpha = alpha_vec[target]
    alpha_sel = jnp.sum(mask * alpha_ref[...], axis=0, keepdims=True)   # (1, T)

    g = float(gamma)
    if g > 0.0:
        one_minus = 1.0 - probs
        if g == int(g):
            # integer gamma (default 2): repeated VPU multiplies, no transcendentals
            w = one_minus
            for _ in range(int(g) - 1):
                w = w * one_minus
        else:
            w = jnp.power(one_minus, jnp.float32(g))
        batch_loss = -alpha_sel * w * log_probs
    else:
        batch_loss = -alpha_sel * log_probs

    if need_mask:
        global_tile = s_pid * tiles_per_seg + j
        is_full = (global_tile + 1) * tile_hw <= hw            # scalar: tile fully in-bounds

        @pl.when(is_full)
        def _():
            loss_acc[...] += batch_loss
            alpha_acc[...] += alpha_sel

        @pl.when(jnp.logical_not(is_full))
        def _():
            # ragged tail (or fully padded segment tile): mask OOB lanes
            lane = jax.lax.broadcasted_iota(jnp.int32, (1, T), 1)
            in_b = (global_tile * tile_hw + lane) < hw
            loss_acc[...] += jnp.where(in_b, batch_loss, 0.0)
            alpha_acc[...] += jnp.where(in_b, alpha_sel, 0.0)
    else:
        loss_acc[...] += batch_loss
        alpha_acc[...] += alpha_sel

    @pl.when(j == pl.num_programs(2) - 1)
    def _():
        loss_out_ref[...] = jnp.sum(loss_acc[...]).reshape(1, 1)
        alpha_out_ref[...] = jnp.sum(alpha_acc[...]).reshape(1, 1)


def focal_loss_pallas(logits_nchw, target_nhw, alpha_vec, *,
                      gamma=2.0, size_average=True,
                      tile_hw=None, hw_segments=2):
    """logits_nchw: (N, C, H, W) float (f32/bf16); target_nhw: (N, H, W) int
    (int8/int16/int32 all fine); alpha_vec: (C,)."""
    N, C, H, W = logits_nchw.shape
    HW = H * W

    # No transpose, no pad: keep NCHW, put H*W on the lane axis (free reshapes).
    # Inputs stream in their native dtype; widening happens in-register in the kernel.
    x = logits_nchw.reshape(N, C, HW)
    tgt = target_nhw.reshape(N, 1, HW)
    if not jnp.issubdtype(tgt.dtype, jnp.integer):
        tgt = tgt.astype(jnp.int32)
    alpha = alpha_vec.astype(jnp.float32).reshape(C, 1)

    logit_bytes = jnp.dtype(x.dtype).itemsize
    tgt_bytes = jnp.dtype(tgt.dtype).itemsize
    # per-lane VMEM cost: double-buffered logits+targets plus 2 f32 scratch vectors
    bytes_per_lane = 2 * (C * logit_bytes + tgt_bytes) + 2 * 4

    try:
        vmem_cap = int(pltpu.get_tpu_info().vmem_capacity_bytes)
    except Exception:
        vmem_cap = 64 << 20           # conservative fallback (v7x-sized VMEM)

    if tile_hw is None:
        budget = (3 * vmem_cap) // 8  # leave headroom for pipelining / compiler scratch
        t_budget = max(512, min(65536, (budget // bytes_per_lane) // 128 * 128))
    else:
        t_budget = max(128, (int(tile_hw) // 128) * 128)

    if HW % 128 == 0:
        t_hw = min(t_budget, HW)
    elif HW >= 128:
        t_hw = min(t_budget, (HW // 128) * 128)   # ragged tail masked in-kernel
    else:
        t_hw = HW                                  # tiny map: single full-extent block

    tiles_total = pl.cdiv(HW, t_hw)
    # Second "parallel" axis over HW segments so both v7x TensorCores are busy
    # even when N is 1 (no-op on single-TC v5e/v6e).
    num_seg = max(1, min(int(hw_segments), tiles_total))
    tiles_per_seg = pl.cdiv(tiles_total, num_seg)
    need_mask = (num_seg * tiles_per_seg * t_hw) > HW

    if num_seg * tiles_per_seg == tiles_total:
        def tile_idx(s, j):
            return s * tiles_per_seg + j
    else:
        # clamp padded segment tiles onto the last real tile; their contribution
        # is fully masked out in the kernel
        def tile_idx(s, j):
            return jnp.minimum(s * tiles_per_seg + j, tiles_total - 1)

    logits_spec = pl.BlockSpec((None, C, t_hw), lambda n, s, j: (n, 0, tile_idx(s, j)))
    tgt_spec = pl.BlockSpec((None, 1, t_hw), lambda n, s, j: (n, 0, tile_idx(s, j)))
    alpha_spec = pl.BlockSpec((C, 1), lambda n, s, j: (0, 0))           # resident
    loss_out_spec = pl.BlockSpec((None, None, 1, 1), lambda n, s, j: (n, s, 0, 0))
    alpha_out_spec = pl.BlockSpec((None, None, 1, 1), lambda n, s, j: (n, s, 0, 0))

    footprint = bytes_per_lane * t_hw + 2 * C * 4
    vmem_limit = min(vmem_cap - (8 << 20), max(32 << 20, footprint + (4 << 20)))

    cost = pl.CostEstimate(
        flops=int(N * HW * (6 * C + 12)),
        transcendentals=int(N * HW * (C + 1)),
        bytes_accessed=int(N * HW * (C * logit_bytes + tgt_bytes)
                           + C * 4 + N * num_seg * 2 * 4),
    )

    kernel = functools.partial(_focal_kernel, gamma=float(gamma), hw=HW,
                               tile_hw=t_hw, tiles_per_seg=tiles_per_seg,
                               need_mask=bool(need_mask))

    loss_part, alpha_part = pl.pallas_call(
        kernel,
        out_shape=(jax.ShapeDtypeStruct((N, num_seg, 1, 1), jnp.float32),
                   jax.ShapeDtypeStruct((N, num_seg, 1, 1), jnp.float32)),
        grid_spec=pltpu.PrefetchScalarGridSpec(
            num_scalar_prefetch=0,
            grid=(N, num_seg, tiles_per_seg),
            in_specs=[logits_spec, tgt_spec, alpha_spec],
            out_specs=[loss_out_spec, alpha_out_spec],
            scratch_shapes=[pltpu.VMEM((1, t_hw), jnp.float32),   # loss lane-accumulator
                            pltpu.VMEM((1, t_hw), jnp.float32)],  # alpha lane-accumulator
        ),
        compiler_params=pltpu.CompilerParams(
            dimension_semantics=("parallel", "parallel", "arbitrary"),
            vmem_limit_bytes=int(vmem_limit)),
        cost_estimate=cost,
    )(x, tgt, alpha)

    loss_sum = jnp.sum(loss_part)
    alpha_sum = jnp.sum(alpha_part)
    if size_average:
        return loss_sum / alpha_sum
    return loss_sum


def focal_loss_ref(logits_nchw, target_nhw, alpha_vec, gamma=2.0, size_average=True):
    """Pure-JAX reference mirroring the PyTorch forward."""
    N, C, H, W = logits_nchw.shape
    p = jax.nn.softmax(logits_nchw.astype(jnp.float32), axis=1)
    p = jnp.transpose(p, (0, 2, 3, 1)).reshape(-1, C)
    t = target_nhw.reshape(-1).astype(jnp.int32)
    mask = jax.nn.one_hot(t, C, dtype=jnp.float32)
    alpha = alpha_vec.astype(jnp.float32)[t][:, None]
    probs = jnp.sum(p * mask, axis=1, keepdims=True) + 1e-10
    logp = jnp.log(probs)
    if gamma > 0:
        bl = -alpha * jnp.power(1.0 - probs, gamma) * logp
    else:
        bl = -alpha * logp
    return jnp.sum(bl) / jnp.sum(alpha) if size_average else jnp.sum(bl)


if __name__ == "__main__":
    key = jax.random.PRNGKey(0)

    # Case 1: small, 128-aligned HW (HW=256 -> single tile, single segment).
    k1, k2, k3, k4 = jax.random.split(key, 4)
    N, C, H, W = 2, 4, 16, 16
    logits = jax.random.normal(k1, (N, C, H, W), dtype=jnp.float32)
    target = jax.random.randint(k2, (N, H, W), 0, C, dtype=jnp.int32)
    # Deterministic parameter init matching nn.Module.__init__ (alpha=None):
    # alpha = ones(class_num, 1) / class_num
    alpha_vec = jnp.ones((C,), dtype=jnp.float32) / C

    loss = focal_loss_pallas(logits, target, alpha_vec, gamma=2.0, size_average=True)
    loss = jax.block_until_ready(loss)
    ref = focal_loss_ref(logits, target, alpha_vec, gamma=2.0, size_average=True)
    assert jnp.allclose(loss, ref, rtol=1e-5, atol=1e-5), (loss, ref)

    # Case 2: non-128-multiple HW (20x20=400), forced small tile -> exercises the
    # ragged-tail masking, the 2-segment parallel split and per-segment reduce.
    N2, C2, H2, W2 = 1, 5, 20, 20
    logits2 = jax.random.normal(k3, (N2, C2, H2, W2), dtype=jnp.float32)
    target2 = jax.random.randint(k4, (N2, H2, W2), 0, C2, dtype=jnp.int32)
    alpha2 = jnp.ones((C2,), dtype=jnp.float32) / C2

    loss2 = focal_loss_pallas(logits2, target2, alpha2, gamma=2.0,
                              size_average=True, tile_hw=128, hw_segments=2)
    loss2 = jax.block_until_ready(loss2)
    ref2 = focal_loss_ref(logits2, target2, alpha2, gamma=2.0, size_average=True)
    assert jnp.allclose(loss2, ref2, rtol=1e-5, atol=1e-5), (loss2, ref2)

    print("KERNEL_OK")
</pallas_src>

<mosaic_0001>
module attributes {stable_mosaic.version = 11 : i64} {
  func.func @_focal_kernel(%arg0: i32, %arg1: i32, %arg2: i32, %arg3: memref<1x4x256xf32, #tpu.memory_space<vmem>>, %arg4: memref<1x1x256xi32, #tpu.memory_space<vmem>>, %arg5: memref<4x1xf32, #tpu.memory_space<vmem>>, %arg6: memref<1x1x1x1xf32, #tpu.memory_space<vmem>>, %arg7: memref<1x1x1x1xf32, #tpu.memory_space<vmem>>, %arg8: memref<1x256xf32, #tpu.memory_space<vmem>>, %arg9: memref<1x256xf32, #tpu.memory_space<vmem>>) attributes {dimension_semantics = [#tpu.dimension_semantics<parallel>, #tpu.dimension_semantics<parallel>, #tpu.dimension_semantics<arbitrary>], iteration_bounds = array<i64: 2, 1, 1>, scalar_prefetch = 0 : i64, scratch_operands = 2 : i64, tpu.core_type = #tpu.core_type<tc>, window_params = [{transform_indices = @transform_0, window_bounds = array<i64: 1, 4, 256>}, {transform_indices = @transform_1, window_bounds = array<i64: 1, 1, 256>}, {pipeline_mode = #tpu.pipeline_mode<synchronous>, transform_indices = @transform_2, window_bounds = array<i64: 4, 1>}, {transform_indices = @transform_3, window_bounds = array<i64: 1, 1, 1, 1>}, {transform_indices = @transform_4, window_bounds = array<i64: 1, 1, 1, 1>}]} {
    %c0_i32 = arith.constant 0 : i32
    %0 = arith.cmpi eq, %arg2, %c0_i32 : i32
    %1 = arith.extui %0 : i1 to i32
    %c0_i32_0 = arith.constant 0 : i32
    %2 = arith.cmpi ne, %1, %c0_i32_0 : i32
    scf.if %2 {
      %cst_24 = arith.constant 0.000000e+00 : f32
      %47 = vector.broadcast %cst_24 : f32 to vector<1x256xf32>
      %c0_25 = arith.constant 0 : index
      %c0_26 = arith.constant 0 : index
      %48 = vector.load %arg8[%c0_25, %c0_26] : memref<1x256xf32, #tpu.memory_space<vmem>>, vector<1x256xf32>
      tpu.vector_store %arg8[%c0_25, %c0_26], %47 {strides = array<i32>} : memref<1x256xf32, #tpu.memory_space<vmem>>, vector<1x256xf32>,
      %cst_27 = arith.constant 0.000000e+00 : f32
      %49 = vector.broadcast %cst_27 : f32 to vector<1x256xf32>
      %c0_28 = arith.constant 0 : index
      %c0_29 = arith.constant 0 : index
      %50 = vector.load %arg9[%c0_28, %c0_29] : memref<1x256xf32, #tpu.memory_space<vmem>>, vector<1x256xf32>
      tpu.vector_store %arg9[%c0_28, %c0_29], %49 {strides = array<i32>} : memref<1x256xf32, #tpu.memory_space<vmem>>, vector<1x256xf32>,
    } else {
    }
    %c0 = arith.constant 0 : index
    %c0_1 = arith.constant 0 : index
    %c0_2 = arith.constant 0 : index
    %3 = vector.load %arg3[%c0, %c0_1, %c0_2] : memref<1x4x256xf32, #tpu.memory_space<vmem>>, vector<1x4x256xf32>
    %4 = vector.shape_cast %3 : vector<1x4x256xf32> to vector<4x256xf32>
    %c0_3 = arith.constant 0 : index
    %c0_4 = arith.constant 0 : index
    %c0_5 = arith.constant 0 : index
    %5 = vector.load %arg4[%c0_3, %c0_4, %c0_5] : memref<1x1x256xi32, #tpu.memory_space<vmem>>, vector<1x1x256xi32>
    %6 = vector.shape_cast %5 : vector<1x1x256xi32> to vector<1x256xi32>
    %7 = tpu.iota {dimensions = array<i32: 0>} : vector<4x256xi32>
    %8 = vector.broadcast %6 : vector<1x256xi32> to vector<4x256xi32>
    %9 = arith.cmpi eq, %7, %8 : vector<4x256xi32>
    %10 = arith.extui %9 : vector<4x256xi1> to vector<4x256xi32>
    %11 = arith.sitofp %10 : vector<4x256xi32> to vector<4x256xf32>
    %cst = arith.constant dense<0xFF800000> : vector<256xf32>
    %12 = vector.multi_reduction <maximumf>, %4, %cst [0] : vector<4x256xf32> to vector<256xf32>
    %13 = vector.shape_cast %12 : vector<256xf32> to vector<1x256xf32>
    %14 = vector.broadcast %13 : vector<1x256xf32> to vector<4x256xf32>
    %15 = arith.subf %4, %14 : vector<4x256xf32>
    %16 = math.exp %15 : vector<4x256xf32>
    %cst_6 = arith.constant dense<0.000000e+00> : vector<256xf32>
    %17 = vector.multi_reduction <add>, %16, %cst_6 [0] : vector<4x256xf32> to vector<256xf32>
    %18 = vector.shape_cast %17 : vector<256xf32> to vector<1x256xf32>
    %19 = arith.mulf %16, %11 : vector<4x256xf32>
    %cst_7 = arith.constant dense<0.000000e+00> : vector<256xf32>
    %20 = vector.multi_reduction <add>, %19, %cst_7 [0] : vector<4x256xf32> to vector<256xf32>
    %21 = vector.shape_cast %20 : vector<256xf32> to vector<1x256xf32>
    %22 = arith.divf %21, %18 : vector<1x256xf32>
    %cst_8 = arith.constant 1.000000e-10 : f32
    %23 = vector.broadcast %cst_8 : f32 to vector<1x256xf32>
    %24 = arith.addf %22, %23 : vector<1x256xf32>
    %25 = math.log %24 : vector<1x256xf32>
    %c0_9 = arith.constant 0 : index
    %c0_10 = arith.constant 0 : index
    %26 = vector.load %arg5[%c0_9, %c0_10] : memref<4x1xf32, #tpu.memory_space<vmem>>, vector<4x1xf32>
    %27 = vector.broadcast %26 : vector<4x1xf32> to vector<4x256xf32>
    %28 = arith.mulf %11, %27 : vector<4x256xf32>
    %cst_11 = arith.constant dense<0.000000e+00> : vector<256xf32>
    %29 = vector.multi_reduction <add>, %28, %cst_11 [0] : vector<4x256xf32> to vector<256xf32>
    %30 = vector.shape_cast %29 : vector<256xf32> to vector<1x256xf32>
    %cst_12 = arith.constant 1.000000e+00 : f32
    %31 = vector.broadcast %cst_12 : f32 to vector<1x256xf32>
    %32 = arith.subf %31, %24 : vector<1x256xf32>
    %33 = arith.mulf %32, %32 : vector<1x256xf32>
    %cst_13 = arith.constant 0.000000e+00 : f32
    %34 = vector.broadcast %cst_13 : f32 to vector<1x256xf32>
    %35 = arith.subf %34, %30 : vector<1x256xf32>
    %36 = arith.mulf %35, %33 : vector<1x256xf32>
    %37 = arith.mulf %36, %25 : vector<1x256xf32>
    %c0_14 = arith.constant 0 : index
    %c0_15 = arith.constant 0 : index
    %38 = vector.load %arg8[%c0_14, %c0_15] : memref<1x256xf32, #tpu.memory_space<vmem>>, vector<1x256xf32>
    %39 = arith.addf %38, %37 : vector<1x256xf32>
    %c0_16 = arith.constant 0 : index
    %c0_17 = arith.constant 0 : index
    %40 = vector.load %arg8[%c0_16, %c0_17] : memref<1x256xf32, #tpu.memory_space<vmem>>, vector<1x256xf32>
    tpu.vector_store %arg8[%c0_16, %c0_17], %39 {strides = array<i32>} : memref<1x256xf32, #tpu.memory_space<vmem>>, vector<1x256xf32>,
    %c0_18 = arith.constant 0 : index
    %c0_19 = arith.constant 0 : index
    %41 = vector.load %arg9[%c0_18, %c0_19] : memref<1x256xf32, #tpu.memory_space<vmem>>, vector<1x256xf32>
    %42 = arith.addf %41, %30 : vector<1x256xf32>
    %c0_20 = arith.constant 0 : index
    %c0_21 = arith.constant 0 : index
    %43 = vector.load %arg9[%c0_20, %c0_21] : memref<1x256xf32, #tpu.memory_space<vmem>>, vector<1x256xf32>
    tpu.vector_store %arg9[%c0_20, %c0_21], %42 {strides = array<i32>} : memref<1x256xf32, #tpu.memory_space<vmem>>, vector<1x256xf32>,
    %c0_i32_22 = arith.constant 0 : i32
    %44 = arith.cmpi eq, %arg2, %c0_i32_22 : i32
    %45 = arith.extui %44 : i1 to i32
    %c0_i32_23 = arith.constant 0 : i32
    %46 = arith.cmpi ne, %45, %c0_i32_23 : i32
    scf.if %46 {
      %c0_24 = arith.constant 0 : index
      %c0_25 = arith.constant 0 : index
      %47 = vector.load %arg8[%c0_24, %c0_25] : memref<1x256xf32, #tpu.memory_space<vmem>>, vector<1x256xf32>
      %48 = vector.shape_cast %47 : vector<1x256xf32> to vector<1x1x256xf32>
      %cst_26 = arith.constant dense<0.000000e+00> : vector<1xf32>
      %49 = vector.multi_reduction <add>, %48, %cst_26 [1, 2] : vector<1x1x256xf32> to vector<1xf32>
      %50 = vector.shape_cast %49 : vector<1xf32> to vector<1x1x1xf32>
      %51 = vector.extract %50[0, 0, 0] : f32 from vector<1x1x1xf32>
      %52 = vector.broadcast %51 : f32 to vector<1x1xf32>
      %c0_27 = arith.constant 0 : index
      %c0_28 = arith.constant 0 : index
      %c0_29 = arith.constant 0 : index
      %c0_30 = arith.constant 0 : index
      %53 = vector.load %arg6[%c0_27, %c0_28, %c0_29, %c0_30] : memref<1x1x1x1xf32, #tpu.memory_space<vmem>>, vector<1x1x1x1xf32>
      %54 = vector.shape_cast %53 : vector<1x1x1x1xf32> to vector<1x1xf32>
      %55 = vector.shape_cast %52 : vector<1x1xf32> to vector<1x1x1x1xf32>
      tpu.vector_store %arg6[%c0_27, %c0_28, %c0_29, %c0_30], %55 {strides = array<i32>} : memref<1x1x1x1xf32, #tpu.memory_space<vmem>>, vector<1x1x1x1xf32>,
      %c0_31 = arith.constant 0 : index
      %c0_32 = arith.constant 0 : index
      %56 = vector.load %arg9[%c0_31, %c0_32] : memref<1x256xf32, #tpu.memory_space<vmem>>, vector<1x256xf32>
      %57 = vector.shape_cast %56 : vector<1x256xf32> to vector<1x1x256xf32>
      %cst_33 = arith.constant dense<0.000000e+00> : vector<1xf32>
      %58 = vector.multi_reduction <add>, %57, %cst_33 [1, 2] : vector<1x1x256xf32> to vector<1xf32>
      %59 = vector.shape_cast %58 : vector<1xf32> to vector<1x1x1xf32>
      %60 = vector.extract %59[0, 0, 0] : f32 from vector<1x1x1xf32>
      %61 = vector.broadcast %60 : f32 to vector<1x1xf32>
      %c0_34 = arith.constant 0 : index
      %c0_35 = arith.constant 0 : index
      %c0_36 = arith.constant 0 : index
      %c0_37 = arith.constant 0 : index
      %62 = vector.load %arg7[%c0_34, %c0_35, %c0_36, %c0_37] : memref<1x1x1x1xf32, #tpu.memory_space<vmem>>, vector<1x1x1x1xf32>
      %63 = vector.shape_cast %62 : vector<1x1x1x1xf32> to vector<1x1xf32>
      %64 = vector.shape_cast %61 : vector<1x1xf32> to vector<1x1x1x1xf32>
      tpu.vector_store %arg7[%c0_34, %c0_35, %c0_36, %c0_37], %64 {strides = array<i32>} : memref<1x1x1x1xf32, #tpu.memory_space<vmem>>, vector<1x1x1x1xf32>,
    } else {
    }
    return
  }
  func.func @transform_0(%arg0: i32, %arg1: i32, %arg2: i32) -> (i32, i32, i32) {
    %c1_i32 = arith.constant 1 : i32
    %0 = arith.muli %arg1, %c1_i32 : i32
    %1 = arith.addi %0, %arg2 : i32
    %c0_i32 = arith.constant 0 : i32
    %c0_i32_0 = arith.constant 0 : i32
    return %arg0, %c0_i32, %1 : i32, i32, i32
  }
  func.func @transform_1(%arg0: i32, %arg1: i32, %arg2: i32) -> (i32, i32, i32) {
    %c1_i32 = arith.constant 1 : i32
    %0 = arith.muli %arg1, %c1_i32 : i32
    %1 = arith.addi %0, %arg2 : i32
    %c0_i32 = arith.constant 0 : i32
    %c0_i32_0 = arith.constant 0 : i32
    return %arg0, %c0_i32, %1 : i32, i32, i32
  }
  func.func @transform_2(%arg0: i32, %arg1: i32, %arg2: i32) -> (i32, i32) {
    %c0_i32 = arith.constant 0 : i32
    %c0_i32_0 = arith.constant 0 : i32
    %c0_i32_1 = arith.constant 0 : i32
    return %c0_i32, %c0_i32_0 : i32, i32
  }
  func.func @transform_3(%arg0: i32, %arg1: i32, %arg2: i32) -> (i32, i32, i32, i32) {
    %c0_i32 = arith.constant 0 : i32
    %c0_i32_0 = arith.constant 0 : i32
    %c0_i32_1 = arith.constant 0 : i32
    return %arg0, %arg1, %c0_i32, %c0_i32_0 : i32, i32, i32, i32
  }
  func.func @transform_4(%arg0: i32, %arg1: i32, %arg2: i32) -> (i32, i32, i32, i32) {
    %c0_i32 = arith.constant 0 : i32
    %c0_i32_0 = arith.constant 0 : i32
    %c0_i32_1 = arith.constant 0 : i32
    return %arg0, %arg1, %c0_i32, %c0_i32_0 : i32, i32, i32, i32
  }
}

</mosaic_0001>

<bundles_post_ra>
// kernel: tpu_custom_call.1
= control target key start
LH: loop header
LB: loop body
LE: loop exit
PB: predicated region body
PF: predicated region fallthrough
CT: control target
= control target key end

     0   :  { %10 = vsyncpa [#allocation5], 0  ;;  %s1001_s0 = inlined_call_operand.hbm [shape: f32[2,4,256], index: 0, kind: input, shape index: {}]   ;;  %s1002_s1 = inlined_call_operand.vmem [shape: s32[2,1,256], index: 1, kind: input, shape index: {}]   ;;  %s1003_s2 = inlined_call_operand.vmem [shape: f32[4,1], index: 2, kind: input, shape index: {}]   ;;  %s1004_s3 = inlined_call_operand.vmem [shape: f32[2,1,1,1], index: 3, kind: output, shape index: {0}]   ;;  %s1005_s4 = inlined_call_operand.vmem [shape: f32[2,1,1,1], index: 4, kind: output, shape index: {1}]  }
   0x1   :  { %12 = vsyncpa [#allocation5 + $0x1], 0  ;;  %s867_s15 = smov 0   ;;  %s869_s16 = smov 0  }
   0x2   :  { %s871_s17 = smov 0   ;;  %s873_s18 = smov 0  }
   0x3   :  { %s875_s19 = smov 0   ;;  %s877_s20 = smov 0  }
   0x4 LB: > { %s671_s21 = sadd.s32 4294967295, %s838_s20   ;;  %s37_s22 = sadd.s32 1, %s834_s19  ;;  %s838_s20 = sphi %s877_s20, %s18_s20   ;;  %s834_s19 = sphi %s875_s19, %s1014_s19   ;;  %s830_s18 = sphi %s873_s18, %s1013_s18   ;;  %s826_s17 = sphi %s871_s17, %s1012_s17   ;;  %s822_s16 = sphi %s869_s16, %s1011_s16   ;;  %s818_s15 = sphi %s867_s15, %s1010_s15  }
   0x5   : > { %p39_p0 = scmp.ge.s32.totalorder %s37_s22, 2  ;;  %s48_s23 = sadd.s32 1, %s826_s17 }
   0x6   : > { %p55_p1 = scmp.ne.s32.totalorder %s826_s17, %s822_s16  ;;  %p56_p2 = scmp.eq.s32.totalorder %s838_s20, 0 }
   0x7   : > { %s1016_s22 = smov (%p39_p0, %s37_s22), 0  ;;  %p61_p4 = scmp.ne.s32.totalorder %s822_s16, %s818_s15 }
   0x8   : > { %p903_p3 = por %p56_p2, %p55_p1  ;;  %s43_s25 = ssub.s32 %s834_s19, %s1016_s22 }
   0x9   : > { %p62_p5 = scmp.eq.s32.totalorder %s671_s21, 0  ;;  %p46_p6 = scmp.eq.s32.totalorder %s43_s25, 0 }
   0xa   : > { %p696_p8 = scmp.lt.s32.totalorder %s838_s20, 2  ;;  %s195_s28 = sand.u32 1, %s826_s17  }
   0xb   : > { %p910_p7 = por %p62_p5, %p61_p4  ;;  %s685_s29 = sshll.u32 %s834_s19, 3 }
   0xc   : > { %s916_s27 = scalar_select %p46_p6, %s826_s17, %s48_s23  }
   0xd   : > { %s675_s30 = sshll.u32 %s195_s28, 3  ;;  %s207_s7 = scalar_lea.hbm %s1001_s0, %s685_s29 }
   0xe   : > { %s209_s8 = sshll.u32 %s207_s7, 4  ;;  %s199_s9 = scalar_lea.vmem [#allocation4], %s675_s30  ;;  %s210_s8 = int_to_ptr.hbm [resolvable:$true] %s209_s8 }
   0xf   : > { %s211_s10 = sshll.u32 %s199_s9, 4  ;;  %p693_p9 = pnand %p696_p8, %p903_p3  ;;  %s212_s10 = int_to_ptr.vmem [resolvable:$true] %s211_s10 }
  0x10   : > { %p678_p10 = scmp.ge.s32.totalorder %s838_s20, 1  ;;  %p230_p11 = scmp.lt.s32.totalorder %s838_s20, 3 }
  0x11   : > { %s196_s11 = scalar_lea.sflag [#allocation5], %s195_s28 }
  0x12   : > { %695 = dma.hbm_to_vmem [thread:$0]  (!%p693_p9), %s210_s8, 128, %s212_s10, %s196_s11  }
  0x13   : > { %p231_p12 = pnand %p678_p10, %p230_p11 }
  0x14   : > { %s236_s12 = sand.u32 (!%p231_p12), 1, %s822_s16  }
  0x15   : > { %234 = sbr.rel (%p231_p12) target bundleno = 364 (0x16c), region = 32  ;;  %s679_s13 = sshll.u32 (!%p231_p12), %s236_s12, 3 }
  0x16   : > { %s237_s14 = scalar_lea.sflag (!%p231_p12), [#allocation5], %s236_s12  ;;  %s240_s15 = scalar_lea.vmem (!%p231_p12), [#allocation4], %s679_s13 }
  0x1a   : > { %813 = dma.done.wait (%p910_p7), %s237_s14, 128  }
  0x1b   : > { %815 = vsyncadd (%p910_p7), %s237_s14, 4294967168  ;;  %v311_v0 = vlaneseq  ;;  %v840_v1 = vmov 0   ;;  %v841_v3 = vmov 0.0   ;;  %v440_v4 = vld [vmem:[%s1003_s2] sm:$0xf]  ;;  %v317_v5 = vld [vmem:[%s240_s15] sm:$0xff] }
  0x1c   : > { %747 = vset.pattern.permute.xlu0 %v840_v1  ;;  %330 = vst [vmem:[#allocation1] ss:$2 sm:$0xff] %v317_v5  ;;  %vm335_vm1 = vcmask 1043456   ;;  %p286_p13 = scmp.lt.s32.totalorder %s830_s18, 1  ;;  %vm476_vm12 = vcmask 1040384   ;;  %vm515_vm13 = vcmask 0  }
  0x1d   : > { %vm932_vm0 = vcmp.lt.s32.totalorder %v311_v0, 256  ;;  %443 = vperm.xlu0 %747, %v440_v4   ;;  %v320_v27 = vshrl.u32 %v311_v0, 7 }
  0x1e   : > { %315 = vst.msk [vmem:[#allocation2] sm:$0x3] %vm932_vm0, %v841_v3  ;;  %s1018_s18 = smov (!%p286_p13, %s830_s18), 1 }
  0x1f   : > { %316 = vst.msk [vmem:[#allocation3] sm:$0x3] %vm932_vm0, %v841_v3  ;;  %s680_s24 = sshll.u32 %s1018_s18, 1  ;;  %s300_s5 = scalar_lea.vmem %s1004_s3, %s1018_s18 }
  0x20   : > { %s292_s28 = scalar_lea.vmem %s1002_s1, %s680_s24  ;;  %s306_s9 = scalar_lea.vmem %s1005_s4, %s1018_s18 }
  0x21   : > { %v318_v28 = vld [vmem:[%s292_s28] sm:$0x3] }
  0x22   : > { %v322_v30 = vperm.slane %v318_v28, 1  ;;  %v321_v35 = vperm.slane %v318_v28, 0 }
  0x23   : > { %v332_v6 = vld.sshfl [vmem:[#allocation1 + $0x8] sm:$0xff pattern:$0x75316420]  ;;  %v331_v8 = vld.sshfl [vmem:[#allocation1] sm:$0xff pattern:$0x75316420] }
  0x24   : > { %v343_v7 = vsel %vm335_vm1, %v332_v6, -inf  ;;  %v336_v10 = vsel %vm335_vm1, %v331_v8, -inf  ;;  %vm324_vm2 = vcmp.eq.s32.totalorder %v320_v27, %v322_v30  ;;  %vm323_vm3 = vcmp.eq.s32.totalorder %v320_v27, %v321_v35 }
  0x25   : > { %v344_v9 = vrot.slane %v343_v7, 4  ;;  %v337_v11 = vrot.slane %v336_v10, 4  ;;  %v956_v37 = vsel %vm324_vm2, 1.0, %v841_v3  ;;  %v681_v40 = vsel %vm323_vm3, 1.0, %v841_v3 }
  0x26   : > { %v380_v39 = vrot.slane %v956_v37, 4 }
  0x27   : > { %v345_v12 = vmax.f32 %v343_v7, %v344_v9  ;;  %v338_v13 = vmax.f32 %v336_v10, %v337_v11 }
  0x28   : > { %v381_v42 = vsel %vm335_vm1, %v681_v40, %v380_v39 }
  0x29   : > { %v346_v14 = vrot.slane %v345_v12, 2  ;;  %v339_v15 = vrot.slane %v338_v13, 2 }
  0x2b   : > { %v347_v16 = vmax.f32 %v345_v12, %v346_v14  ;;  %v340_v17 = vmax.f32 %v338_v13, %v339_v15 }
  0x2d   : > { %v348_v18 = vrot.slane %v347_v16, 1  ;;  %v341_v19 = vrot.slane %v340_v17, 1 }
  0x2f   : > { %v349_v20 = vmax.f32 %v347_v16, %v348_v18  ;;  %v342_v21 = vmax.f32 %v340_v17, %v341_v19 }
  0x31   : > { %v352_v22 = vrot.slane %v349_v20, 4 }
  0x33   : > { %v353_v23 = vsel %vm335_vm1, %v342_v21, %v352_v22 }
  0x34   : > { %v355_v24 = vsub.f32 %v317_v5, %v353_v23 }
  0x36   : > { %v356_v25 = vmul.f32 1.442695, %v355_v24 }
  0x38   : > { %748 = vpow2.f32 %v356_v25 }
  0x3e   : > { %v749_v26 = vpop.eup %748 }
  0x3f   : > { %359 = vst [vmem:[#allocation1] ss:$2 sm:$0xff] %v749_v26  ;;  %v383_v44 = vmul.f32 %v749_v26, %v381_v42 }
  0x46   : > { %v360_v29 = vld.sshfl [vmem:[#allocation1] sm:$0xff pattern:$0x75316420]  ;;  %v361_v31 = vld.sshfl [vmem:[#allocation1 + $0x8] sm:$0xff pattern:$0x75316420] }
  0x47   : > { %v364_v32 = vsel %vm335_vm1, %v360_v29, 0.0  ;;  %v371_v34 = vsel %vm335_vm1, %v361_v31, 0.0  ;;  %385 = vst [vmem:[#allocation1] ss:$2 sm:$0xff] %v383_v44 }
  0x48   : > { %v365_v33 = vrot.slane %v364_v32, 4  ;;  %v372_v36 = vrot.slane %v371_v34, 4 }
  0x4a   : > { %v373_v38 = vadd.f32 %v372_v36, %v371_v34  ;;  %v366_v41 = vadd.f32 %v365_v33, %v364_v32 }
  0x4c   : > { %v374_v43 = vrot.slane %v373_v38, 2  ;;  %v367_v45 = vrot.slane %v366_v41, 2 }
  0x4e   : > { %v375_v46 = vadd.f32 %v374_v43, %v373_v38  ;;  %v368_v47 = vadd.f32 %v367_v45, %v366_v41  ;;  %v387_v52 = vld.sshfl [vmem:[#allocation1 + $0x8] sm:$0xff pattern:$0x75316420]  ;;  %v386_v53 = vld.sshfl [vmem:[#allocation1] sm:$0xff pattern:$0x75316420] }
  0x4f   : > { %v397_v54 = vsel %vm335_vm1, %v387_v52, 0.0  ;;  %v390_v56 = vsel %vm335_vm1, %v386_v53, 0.0  ;;  %v485_v52 = vld [vmem:[#allocation3] sm:$0x3] }
  0x50   : > { %v376_v48 = vrot.slane %v375_v46, 1  ;;  %v369_v49 = vrot.slane %v368_v47, 1  ;;  %v398_v57 = vrot.slane %v397_v54, 4  ;;  %v391_v59 = vrot.slane %v390_v56, 4 }
  0x52   : > { %v377_v50 = vadd.f32 %v376_v48, %v375_v46  ;;  %v370_v51 = vadd.f32 %v369_v49, %v368_v47  ;;  %v399_v61 = vadd.f32 %v398_v57, %v397_v54  ;;  %v392_v63 = vadd.f32 %v391_v59, %v390_v56 }
  0x54   : > { %750 = vrcp.f32 %v377_v50  ;;  %v400_v1 = vrot.slane %v399_v61, 2  ;;  %v393_v4 = vrot.slane %v392_v63, 2  ;;  %vm424_vm4 = vweird.f32 %v377_v50 }
  0x55   : > { %752 = vrcp.f32 %v370_v51  ;;  %vm409_vm6 = vweird.f32 %v370_v51  ;;  %v430_v8 = vand.u32 2147483648, %v377_v50  ;;  %v428_v11 = vand.u32 2147483647, %v377_v50 }
  0x56   : > { %v401_v6 = vadd.f32 %v400_v1, %v399_v61  ;;  %v394_v9 = vadd.f32 %v393_v4, %v392_v63  ;;  %v415_v12 = vand.u32 2147483648, %v370_v51  ;;  %v413_v15 = vand.u32 2147483647, %v370_v51  ;;  %v472_v1 = vld [vmem:[#allocation2] sm:$0x3] }
  0x57   : > { %v431_v16 = vor.u32 1.1754944e-38, %v430_v8  ;;  %vm429_vm10 = vcmp.eq.f32.partialorder %v428_v11, 8.507059e+37 }
  0x58   : > { %v402_v13 = vrot.slane %v401_v6, 1  ;;  %v395_v17 = vrot.slane %v394_v9, 1  ;;  %v416_v19 = vor.u32 1.1754944e-38, %v415_v12  ;;  %vm414_vm11 = vcmp.eq.f32.partialorder %v413_v15, 8.507059e+37 }
  0x5a   : > { %v751_v55 = vpop.eup %750  ;;  %v403_v20 = vadd.f32 %v402_v13, %v401_v6  ;;  %v396_v23 = vadd.f32 %v395_v17, %v394_v9 }
  0x5b   : > { %v753_v58 = vpop.eup %752  ;;  %v420_v60 = vmul.f32 %v751_v55, %v377_v50  ;;  %vm425_vm5 = vweird.f32 %v751_v55 }
  0x5c   : > { %v405_v62 = vmul.f32 %v753_v58, %v370_v51  ;;  %vm410_vm7 = vweird.f32 %v753_v58  ;;  %vm426_vm8 = vmor %vm424_vm4, %vm425_vm5 }
  0x5d   : > { %v421_v0 = vsub.f32 1.0, %v420_v60  ;;  %vm411_vm9 = vmor %vm409_vm6, %vm410_vm7 }
  0x5e   : > { %v406_v3 = vsub.f32 1.0, %v405_v62 }
  0x5f   : > { %v422_v5 = vmul.f32 %v751_v55, %v421_v0 }
  0x60   : > { %v407_v7 = vmul.f32 %v753_v58, %v406_v3 }
  0x61   : > { %v423_v10 = vadd.f32 %v751_v55, %v422_v5 }
  0x62   : > { %v408_v14 = vadd.f32 %v753_v58, %v407_v7 }
  0x63   : > { %v427_v18 = vsel %vm426_vm8, %v751_v55, %v423_v10 }
  0x64   : > { %v412_v21 = vsel %vm411_vm9, %v753_v58, %v408_v14  ;;  %v432_v22 = vsel %vm429_vm10, %v431_v16, %v427_v18 }
  0x65   : > { %v417_v24 = vsel %vm414_vm11, %v416_v19, %v412_v21  ;;  %v433_v25 = vmul.f32 %v432_v22, %v403_v20 }
  0x66   : > { %v418_v27 = vmul.f32 %v417_v24, %v396_v23 }
  0x67   : > { %v435_v30 = vadd.f32 1e-10, %v433_v25 }
  0x68   : > { %v434_v35 = vadd.f32 1e-10, %v418_v27 }
  0x69   : > { %754 = vlog2.f32 %v435_v30 }
  0x6a   : > { %756 = vlog2.f32 %v434_v35  ;;  %v462_v44 = vsub.f32 1.0, %v434_v35 }
  0x6c   : > { %v464_v49 = vmul.f32 %v462_v44, %v462_v44 }
  0x6f   : > { %v755_v46 = vpop.eup %754 }
  0x70   : > { %v757_v51 = vpop.eup %756  ;;  %v439_v53 = vmul.f32 0.6931472, %v755_v46 }
  0x71   : > { %v437_v57 = vmul.f32 0.6931472, %v757_v51 }
  0x8f   : > { %v444_v26 = vpop.permute.xlu0 %443 }
  0x90   : > { %v446_v28 = vmul.f32 %v681_v40, %v444_v26  ;;  %v447_v29 = vmul.f32 %v956_v37, %v444_v26  ;;  %v463_v40 = vsub.f32 1.0, %v435_v30 }
  0x92   : > { %v448_v31 = vsel %vm335_vm1, %v446_v28, 0.0  ;;  %v455_v32 = vsel %vm335_vm1, %v447_v29, 0.0  ;;  %v465_v50 = vmul.f32 %v463_v40, %v463_v40 }
  0x93   : > { %v449_v33 = vrot.slane %v448_v31, 4  ;;  %v456_v34 = vrot.slane %v455_v32, 4 }
  0x95   : > { %v450_v36 = vadd.f32 %v449_v33, %v448_v31  ;;  %v457_v38 = vadd.f32 %v456_v34, %v455_v32 }
  0x97   : > { %v451_v39 = vrot.slane %v450_v36, 2  ;;  %v458_v41 = vrot.slane %v457_v38, 2 }
  0x99   : > { %v452_v42 = vadd.f32 %v451_v39, %v450_v36  ;;  %v459_v43 = vadd.f32 %v458_v41, %v457_v38 }
  0x9b   : > { %v453_v45 = vrot.slane %v452_v42, 1  ;;  %v460_v37 = vrot.slane %v459_v43, 1 }
  0x9d   : > { %v454_v47 = vadd.f32 %v453_v45, %v452_v42  ;;  %v461_v48 = vadd.f32 %v460_v37, %v459_v43 }
  0x9f   : > { %v466_v54 = vsub.f32 0.0, %v454_v47  ;;  %v467_v55 = vsub.f32 0.0, %v461_v48  ;;  %v488_v56 = vrot.slane %v461_v48, 7 }
  0xa1   : > { %v468_v58 = vmul.f32 %v466_v54, %v464_v49  ;;  %v469_v59 = vmul.f32 %v467_v55, %v465_v50  ;;  %v489_v60 = vsel %vm476_vm12, %v454_v47, %v488_v56 }
  0xa2   : > { %v491_v61 = vadd.f32 %v489_v60, %v485_v52 }
  0xa3   : > { %v471_v62 = vmul.f32 %v469_v59, %v439_v53  ;;  %v470_v63 = vmul.f32 %v468_v58, %v437_v57 }
  0xa4   : > { %492 = vst.msk [vmem:[#allocation3] sm:$0x3] %vm932_vm0, %v491_v61 }
  0xa5   : > { %v475_v0 = vrot.slane %v471_v62, 7 }
  0xa7   : > { %v477_v3 = vsel %vm476_vm12, %v470_v63, %v475_v0 }
  0xa8   : > { %v479_v4 = vadd.f32 %v477_v3, %v472_v1 }
  0xaa   : > { %484 = vst.msk [vmem:[#allocation2] sm:$0x3] %vm932_vm0, %v479_v4 }
  0xab   : > { %v517_v5 = vld [vmem:[#allocation3] sm:$0x3] }
  0xac   : > { %v519_v6 = vperm.slane %v517_v5, 0  ;;  %v520_v7 = vperm.slane %v517_v5, 1 }
  0xae   : > { %v523_v8 = vsel %vm476_vm12, %v519_v6, 0.0  ;;  %v524_v9 = vsel %vm476_vm12, %v520_v7, 0.0 }
  0xaf   : > { %v525_v10 = vadd.f32 %v524_v9, %v523_v8 }
  0xb1   : > { %526 = vadd.xlane.f32.xlu1 %v525_v10  ;;  %v496_v11 = vld [vmem:[#allocation2] sm:$0x3] }
  0xb2   : > { %v498_v12 = vperm.slane %v496_v11, 0  ;;  %v499_v13 = vperm.slane %v496_v11, 1 }
  0xb4   : > { %v502_v14 = vsel %vm476_vm12, %v498_v12, 0.0  ;;  %v503_v15 = vsel %vm476_vm12, %v499_v13, 0.0 }
  0xb5   : > { %v504_v16 = vadd.f32 %v503_v15, %v502_v14 }
  0xb7   : > { %505 = vadd.xlane.f32.xlu0 %v504_v16 }
 0x124   : > { %v527_v2 = vpop.xlane.xlu1 %526 }
 0x125   : > { %v528_v17 = vrot.slane %v527_v2, 4 }
 0x127   : > { %v529_v18 = vadd.f32 %v528_v17, %v527_v2 }
 0x129   : > { %v530_v19 = vrot.slane %v529_v18, 2 }
 0x12a   : > { %v506_v20 = vpop.xlane.xlu0 %505 }
 0x12b   : > { %v507_v21 = vrot.slane %v506_v20, 4  ;;  %v531_v23 = vadd.f32 %v530_v19, %v529_v18 }
 0x12d   : > { %v508_v22 = vadd.f32 %v507_v21, %v506_v20  ;;  %v532_v26 = vrot.slane %v531_v23, 1 }
 0x12f   : > { %v509_v24 = vrot.slane %v508_v22, 2  ;;  %v533_v29 = vadd.f32 %v532_v26, %v531_v23 }
 0x131   : > { %v510_v25 = vadd.f32 %v509_v24, %v508_v22 }
 0x133   : > { %v511_v27 = vrot.slane %v510_v25, 1 }
 0x135   : > { %v512_v28 = vadd.f32 %v511_v27, %v510_v25 }
 0x137   : > { %686 = vpush %v512_v28 }
 0x138   : > { %688 = vpush %v533_v29 }
 0x168   : > { %s687_s6 = spop %686 }
 0x169   : > { %v514_v30 = vstv %s687_s6  ;;  %s689_s10 = spop %688 }
 0x16a   : > { %516 = vst.msk [vmem:[%s300_s5] sm:$0x1] %vm515_vm13, %v514_v30  ;;  %v535_v31 = vstv %s689_s10 }
 0x16b   : > { %536 = vst.msk [vmem:[%s306_s9] sm:$0x1] %vm515_vm13, %v535_v31 }
 0x16c PF: > { %s18_s20 = sadd.s32 1, %s838_s20   ;;  %s1010_s15 = smov %s822_s16 }
 0x16d   : > { %p15_p0 = scmp.ge.s32.totalorder %s18_s20, 4   ;;  %s1011_s16 = smov %s826_s17 }
 0x16e   : > { %s1012_s17 = smov %s916_s27  ;;  %s1013_s18 = smov %s834_s19 }
 0x16f   : > { %s1014_s19 = smov %s1016_s22  ;;  %17 = sbr.rel (!%p15_p0) target bundleno = 4 (0x4), region = 95 }
 0x174   :  { %578 = vsyncpa [#allocation5], 1 }
 0x175   :  { %580 = vsyncpa [#allocation5 + $0x1], 1 }

</bundles_post_ra>
